<compile_context>
chip_gen: v5e
topology: v5e:2x2
jax: 0.10.0
libtpu: 0.0.40
codegen_flags: <defaults>
</compile_context>

<pallas_src>
import math

import jax
import jax.numpy as jnp
from jax.experimental import pallas as pl
from jax.experimental.pallas import tpu as pltpu


_SQRT_2_OVER_PI = math.sqrt(2.0 / math.pi)


def _gelu_tanh(x):
    # GELU with tanh approximation (matches torch.nn.GELU(approximate='tanh')).
    # tanh goes to the EUP slot; the polynomial stays on the VPU.
    u = _SQRT_2_OVER_PI * (x + 0.044715 * (x * x * x))
    return x * (0.5 + 0.5 * jnp.tanh(u))


def _round_up(x, m):
    return (x + m - 1) // m * m


def _row_align(dtype):
    # Packed sublane size: 8 rows for 32-bit, 16 for bf16/fp16, 32 for int8/fp8.
    it = jnp.dtype(dtype).itemsize
    return 8 if it >= 4 else 32 // it


def _vmem_capacity_bytes():
    try:
        info = pltpu.get_tpu_info()
        cap = getattr(info, "vmem_capacity_bytes", None)
        if cap:
            return int(cap)
    except Exception:
        pass
    return 64 * 1024 * 1024  # conservative fallback (v7x per-core VMEM)


def _vmem_footprint(tm, th, C, out_itemsize, w_itemsize, streamed):
    """Rough per-step VMEM footprint (double-buffered pipeline buffers)."""
    b = 2 * tm * C * w_itemsize          # x tile
    b += 2 * C * th * w_itemsize         # W1 block
    b += 2 * th * C * w_itemsize         # W2 block
    b += 2 * (th + C) * 4                # bias blocks (f32)
    b += 2 * tm * C * out_itemsize       # output tile
    b += tm * th * 4                     # f32 hidden intermediate between the dots
    if streamed and out_itemsize != 4:
        b += tm * C * 4                  # f32 accumulator scratch
    return b


# ----------------------------------------------------------------------------
# Kernels
# ----------------------------------------------------------------------------

def _mlp_kernel_resident(x_ref, w1_ref, b1_ref, w2_ref, b2_ref, o_ref):
    # Whole hidden dim per step: no reduction axis, no accumulator scratch.
    h = jnp.dot(x_ref[...], w1_ref[...], preferred_element_type=jnp.float32)
    h = _gelu_tanh(h + b1_ref[...])
    out = jnp.dot(h.astype(w2_ref.dtype), w2_ref[...],
                  preferred_element_type=jnp.float32)
    o_ref[...] = (out + b2_ref[...]).astype(o_ref.dtype)


def _mlp_kernel_stream_f32out(x_ref, w1_ref, b1_ref, w2_ref, b2_ref, o_ref):
    # Hidden dim streamed; accumulate directly into the resident f32 output tile
    # (no scratch).  b2 is folded into the k==0 initialization.
    k = pl.program_id(1)
    h = jnp.dot(x_ref[...], w1_ref[...], preferred_element_type=jnp.float32)
    h = _gelu_tanh(h + b1_ref[...])
    part = jnp.dot(h.astype(w2_ref.dtype), w2_ref[...],
                   preferred_element_type=jnp.float32)

    @pl.when(k == 0)
    def _():
        o_ref[...] = part + b2_ref[...]

    @pl.when(k > 0)
    def _():
        o_ref[...] += part


def _mlp_kernel_stream_acc(x_ref, w1_ref, b1_ref, w2_ref, b2_ref, o_ref, acc_ref):
    # Hidden dim streamed; f32 scratch accumulator.  b2 folded into init, final
    # partial dot fused straight into the cast+store (acc not re-written last step).
    # Only used when num_programs(1) >= 2.
    k = pl.program_id(1)
    nk = pl.num_programs(1)
    h = jnp.dot(x_ref[...], w1_ref[...], preferred_element_type=jnp.float32)
    h = _gelu_tanh(h + b1_ref[...])
    part = jnp.dot(h.astype(w2_ref.dtype), w2_ref[...],
                   preferred_element_type=jnp.float32)

    @pl.when(k == 0)
    def _():
        acc_ref[...] = part + b2_ref[...]

    @pl.when(jnp.logical_and(k > 0, k < nk - 1))
    def _():
        acc_ref[...] += part

    @pl.when(k == nk - 1)
    def _():
        o_ref[...] = (acc_ref[...] + part).astype(o_ref.dtype)


# ----------------------------------------------------------------------------
# Wrappers
# ----------------------------------------------------------------------------

def prepare_mlp_params(w_fc, b_fc, w_proj, b_proj, compute_dtype=jnp.bfloat16):
    """Cast weights once (outside the per-call forward) to the MXU compute dtype."""
    C, H = w_fc.shape
    assert w_proj.shape == (H, C) and b_fc.shape == (H,) and b_proj.shape == (C,)
    return dict(
        w1=w_fc.astype(compute_dtype),
        b1=b_fc.reshape(1, H).astype(jnp.float32),
        w2=w_proj.astype(compute_dtype),
        b2=b_proj.reshape(1, C).astype(jnp.float32),
    )


def mlp_forward_prepared(x, params, *, tm=512, th=1024, force_stream=False,
                         vmem_limit_bytes=None):
    """x: (B, T, C); params from prepare_mlp_params. Returns (B, T, C) in x.dtype."""
    w1, b1, w2, b2 = params["w1"], params["b1"], params["w2"], params["b2"]
    B, T, C = x.shape
    C_in, H = w1.shape
    assert C_in == C and w2.shape == (H, C)
    assert b1.shape == (1, H) and b2.shape == (1, C)

    compute_dtype = w1.dtype
    out_dtype = x.dtype
    w_itemsize = jnp.dtype(compute_dtype).itemsize
    out_itemsize = jnp.dtype(out_dtype).itemsize
    out_is_f32 = jnp.dtype(out_dtype) == jnp.dtype(jnp.float32)

    M = B * T
    x2d = x.reshape(M, C)
    if x2d.dtype != compute_dtype:
        x2d = x2d.astype(compute_dtype)

    # --- Row tile: align to the packed-sublane size of compute_dtype.
    align = _row_align(compute_dtype)
    m_align = _round_up(M, align)
    tm_eff = max(align, min(_round_up(tm, align), m_align))
    # Keep >= 2 row tiles when there's enough work so a dual-TensorCore chip
    # (v7x) can shard the "parallel" axis across both cores.
    if m_align >= 512 and tm_eff > m_align // 2:
        half = (m_align // 2) // 256 * 256
        if half >= 256:
            tm_eff = min(tm_eff, half)
    M_pad = _round_up(m_align, tm_eff)
    if M_pad != M:
        x2d = jnp.pad(x2d, ((0, M_pad - M), (0, 0)))

    # --- Hidden tile / weight residency decision under an explicit VMEM budget.
    capacity = _vmem_capacity_bytes()
    budget = int(capacity * 0.75)

    def fits(th_c, streamed):
        return _vmem_footprint(tm_eff, th_c, C, out_itemsize, w_itemsize,
                               streamed) <= budget

    if (not force_stream) and fits(H, streamed=False):
        th_eff, n_k = H, 1                       # weights fully resident
    elif H % 128 == 0:
        cands = [c for c in range(128, H + 1, 128) if H % c == 0]
        th_eff = 128
        for c in cands:                          # largest divisor <= th that fits
            if c <= max(th, 128) and fits(c, streamed=True):
                th_eff = c
        n_k = H // th_eff
    else:
        th_eff, n_k = H, 1                       # tiny-model fallback

    single_step = (n_k == 1)
    grid_rows = M_pad // tm_eff

    footprint = _vmem_footprint(tm_eff, th_eff, C, out_itemsize, w_itemsize,
                                streamed=not single_step)
    if vmem_limit_bytes is None:
        vmem_limit_bytes = min(int(capacity * 0.9),
                               max(footprint + footprint // 4 + (4 << 20),
                                   32 << 20))

    weight_passes = 1 if single_step else grid_rows
    cost = pl.CostEstimate(
        flops=4 * M_pad * C * H,                          # two matmuls
        transcendentals=M_pad * H,                        # one tanh per hidden act
        bytes_accessed=(M_pad * C * w_itemsize            # x
                        + M_pad * C * out_itemsize        # out
                        + 2 * C * H * w_itemsize * weight_passes
                        + (H + C) * 4 * weight_passes),
    )

    if single_step:
        grid = (grid_rows,)
        in_specs = [
            pl.BlockSpec((tm_eff, C), lambda i: (i, 0)),   # x tile
            pl.BlockSpec((C, H), lambda i: (0, 0)),        # W1 (resident)
            pl.BlockSpec((1, H), lambda i: (0, 0)),        # b1
            pl.BlockSpec((H, C), lambda i: (0, 0)),        # W2 (resident)
            pl.BlockSpec((1, C), lambda i: (0, 0)),        # b2
        ]
        out_specs = pl.BlockSpec((tm_eff, C), lambda i: (i, 0))
        scratch_shapes = ()
        kernel = _mlp_kernel_resident
        dims = ("parallel",)
    else:
        grid = (grid_rows, n_k)
        in_specs = [
            pl.BlockSpec((tm_eff, C), lambda i, k: (i, 0)),   # x tile
            pl.BlockSpec((C, th_eff), lambda i, k: (0, k)),   # W1 column block
            pl.BlockSpec((1, th_eff), lambda i, k: (0, k)),   # b1 block
            pl.BlockSpec((th_eff, C), lambda i, k: (k, 0)),   # W2 row block
            pl.BlockSpec((1, C), lambda i, k: (0, 0)),        # b2
        ]
        out_specs = pl.BlockSpec((tm_eff, C), lambda i, k: (i, 0))
        if out_is_f32:
            kernel = _mlp_kernel_stream_f32out
            scratch_shapes = ()
        else:
            kernel = _mlp_kernel_stream_acc
            scratch_shapes = (pltpu.VMEM((tm_eff, C), jnp.float32),)
        dims = ("parallel", "arbitrary")

    out2d = pl.pallas_call(
        kernel,
        out_shape=jax.ShapeDtypeStruct((M_pad, C), out_dtype),
        grid_spec=pltpu.PrefetchScalarGridSpec(
            num_scalar_prefetch=0,
            grid=grid,
            in_specs=in_specs,
            out_specs=out_specs,
            scratch_shapes=scratch_shapes,
        ),
        compiler_params=pltpu.CompilerParams(
            dimension_semantics=dims,
            vmem_limit_bytes=int(vmem_limit_bytes)),
        cost_estimate=cost,
    )(x2d, w1, b1, w2, b2)

    return out2d[:M].reshape(B, T, C)


def mlp_forward(x, w_fc, b_fc, w_proj, b_proj, *, compute_dtype=None, **kwargs):
    """Convenience wrapper. Prefer prepare_mlp_params + mlp_forward_prepared so
    the bf16 weight cast happens once, not per forward call."""
    if compute_dtype is None:
        compute_dtype = (jnp.bfloat16
                         if jnp.dtype(x.dtype) == jnp.dtype(jnp.float32)
                         else x.dtype)
    params = prepare_mlp_params(w_fc, b_fc, w_proj, b_proj,
                                compute_dtype=compute_dtype)
    return mlp_forward_prepared(x, params, **kwargs)


# ----------------------------------------------------------------------------
# Reference + test harness
# ----------------------------------------------------------------------------

def mlp_reference(x, w_fc, b_fc, w_proj, b_proj):
    h = jnp.einsum("btc,ch->bth", x, w_fc) + b_fc
    h = _gelu_tanh(h)
    return jnp.einsum("bth,hc->btc", h, w_proj) + b_proj


def _make_inputs(key, B, T, C):
    H = 4 * C
    kx, k1, k2, k3, k4 = jax.random.split(key, 5)
    x = jax.random.normal(kx, (B, T, C), dtype=jnp.float32)
    # Deterministic "Linear"-style init, stored as (in_features, out_features).
    w_fc = jax.random.normal(k1, (C, H), dtype=jnp.float32) * (1.0 / math.sqrt(C))
    b_fc = jax.random.normal(k2, (H,), dtype=jnp.float32) * 0.01
    w_proj = jax.random.normal(k3, (H, C), dtype=jnp.float32) * (1.0 / math.sqrt(H))
    b_proj = jax.random.normal(k4, (C,), dtype=jnp.float32) * 0.01
    return x, w_fc, b_fc, w_proj, b_proj


if __name__ == "__main__":
    # Config consistent with the module: n_embd=32 -> hidden=128, B=2, T=8.
    args = _make_inputs(jax.random.PRNGKey(0), 2, 8, 32)
    ref = mlp_reference(*args)

    # 1) Exact-math path (f32 MXU operands), resident weights, single step.
    out_f32 = jax.block_until_ready(mlp_forward(*args, compute_dtype=jnp.float32))
    assert out_f32.shape == args[0].shape
    assert jnp.allclose(out_f32, ref, atol=1e-4, rtol=1e-4), "f32 mismatch (tiny)"

    # 2) Default fast path: bf16 MXU operands (f32 accumulation), weights cast once.
    params_bf16 = prepare_mlp_params(*args[1:])
    fwd = jax.jit(mlp_forward_prepared)
    out_bf16 = jax.block_until_ready(fwd(args[0], params_bf16))
    assert jnp.allclose(out_bf16, ref, atol=5e-2, rtol=5e-2), "bf16 mismatch (tiny)"

    # 3) Streaming-reduction path: C=128 -> H=512, th=128 forced -> 4 k-steps,
    #    row padding (M=60 -> 64), f32 output accumulated in-place in o_ref.
    args2 = _make_inputs(jax.random.PRNGKey(1), 3, 20, 128)
    ref2 = mlp_reference(*args2)
    out_stream = jax.block_until_ready(
        mlp_forward(*args2, compute_dtype=jnp.float32, tm=16, th=128,
                    force_stream=True))
    assert jnp.allclose(out_stream, ref2, atol=1e-3, rtol=1e-3), "f32 mismatch (stream)"

    # 4) Streaming path with bf16 compute AND bf16 output (scratch accumulator,
    #    final partial dot fused into the cast+store).
    x_bf = args2[0].astype(jnp.bfloat16)
    params2 = prepare_mlp_params(*args2[1:])
    out_stream_bf = jax.block_until_ready(
        mlp_forward_prepared(x_bf, params2, tm=16, th=128, force_stream=True))
    assert out_stream_bf.dtype == jnp.bfloat16
    assert jnp.allclose(out_stream_bf.astype(jnp.float32), ref2,
                        atol=1.5e-1, rtol=1.5e-1), "bf16 mismatch (stream)"

    print("KERNEL_OK")
</pallas_src>

<mosaic_0001>
module attributes {stable_mosaic.version = 11 : i64} {
  func.func @_mlp_kernel_resident(%arg0: i32, %arg1: memref<16x32xf32, #tpu.memory_space<vmem>>, %arg2: memref<32x128xf32, #tpu.memory_space<vmem>>, %arg3: memref<1x128xf32, #tpu.memory_space<vmem>>, %arg4: memref<128x32xf32, #tpu.memory_space<vmem>>, %arg5: memref<1x32xf32, #tpu.memory_space<vmem>>, %arg6: memref<16x32xf32, #tpu.memory_space<vmem>>) attributes {dimension_semantics = [#tpu.dimension_semantics<parallel>], iteration_bounds = array<i64: 1>, scalar_prefetch = 0 : i64, scratch_operands = 0 : i64, tpu.core_type = #tpu.core_type<tc>, window_params = [{transform_indices = @transform_0, window_bounds = array<i64: 16, 32>}, {pipeline_mode = #tpu.pipeline_mode<synchronous>, transform_indices = @transform_1, window_bounds = array<i64: 32, 128>}, {pipeline_mode = #tpu.pipeline_mode<synchronous>, transform_indices = @transform_2, window_bounds = array<i64: 1, 128>}, {pipeline_mode = #tpu.pipeline_mode<synchronous>, transform_indices = @transform_3, window_bounds = array<i64: 128, 32>}, {pipeline_mode = #tpu.pipeline_mode<synchronous>, transform_indices = @transform_4, window_bounds = array<i64: 1, 32>}, {transform_indices = @transform_5, window_bounds = array<i64: 16, 32>}]} {
    %c0 = arith.constant 0 : index
    %c0_0 = arith.constant 0 : index
    %0 = vector.load %arg1[%c0, %c0_0] : memref<16x32xf32, #tpu.memory_space<vmem>>, vector<16x32xf32>
    %c0_1 = arith.constant 0 : index
    %c0_2 = arith.constant 0 : index
    %1 = vector.load %arg2[%c0_1, %c0_2] : memref<32x128xf32, #tpu.memory_space<vmem>>, vector<32x128xf32>
    %cst = arith.constant dense<0.000000e+00> : vector<16x128xf32>
    %2 = tpu.matmul %0, %1, %cst {dimension_numbers = #tpu.dot_dimension_numbers<[1], [0], [0], [1], [0, 0, 1, 1], [], []>} : vector<16x32xf32>, vector<32x128xf32>, vector<16x128xf32> -> vector<16x128xf32>
    %c0_3 = arith.constant 0 : index
    %c0_4 = arith.constant 0 : index
    %3 = vector.load %arg3[%c0_3, %c0_4] : memref<1x128xf32, #tpu.memory_space<vmem>>, vector<1x128xf32>
    %4 = vector.broadcast %3 : vector<1x128xf32> to vector<16x128xf32>
    %5 = arith.addf %2, %4 : vector<16x128xf32>
    %6 = arith.mulf %5, %5 : vector<16x128xf32>
    %7 = arith.mulf %6, %5 : vector<16x128xf32>
    %cst_5 = arith.constant 4.471500e-02 : f32
    %8 = vector.broadcast %cst_5 : f32 to vector<16x128xf32>
    %9 = arith.mulf %8, %7 : vector<16x128xf32>
    %10 = arith.addf %5, %9 : vector<16x128xf32>
    %cst_6 = arith.constant 0.797884583 : f32
    %11 = vector.broadcast %cst_6 : f32 to vector<16x128xf32>
    %12 = arith.mulf %11, %10 : vector<16x128xf32>
    %13 = math.tanh %12 : vector<16x128xf32>
    %cst_7 = arith.constant 5.000000e-01 : f32
    %14 = vector.broadcast %cst_7 : f32 to vector<16x128xf32>
    %15 = arith.mulf %14, %13 : vector<16x128xf32>
    %cst_8 = arith.constant 5.000000e-01 : f32
    %16 = vector.broadcast %cst_8 : f32 to vector<16x128xf32>
    %17 = arith.addf %16, %15 : vector<16x128xf32>
    %18 = arith.mulf %5, %17 : vector<16x128xf32>
    %c0_9 = arith.constant 0 : index
    %c0_10 = arith.constant 0 : index
    %19 = vector.load %arg4[%c0_9, %c0_10] : memref<128x32xf32, #tpu.memory_space<vmem>>, vector<128x32xf32>
    %cst_11 = arith.constant dense<0.000000e+00> : vector<16x32xf32>
    %20 = tpu.matmul %18, %19, %cst_11 {dimension_numbers = #tpu.dot_dimension_numbers<[1], [0], [0], [1], [0, 0, 1, 1], [], []>} : vector<16x128xf32>, vector<128x32xf32>, vector<16x32xf32> -> vector<16x32xf32>
    %c0_12 = arith.constant 0 : index
    %c0_13 = arith.constant 0 : index
    %21 = vector.load %arg5[%c0_12, %c0_13] : memref<1x32xf32, #tpu.memory_space<vmem>>, vector<1x32xf32>
    %22 = vector.broadcast %21 : vector<1x32xf32> to vector<16x32xf32>
    %23 = arith.addf %20, %22 : vector<16x32xf32>
    %c0_14 = arith.constant 0 : index
    %c0_15 = arith.constant 0 : index
    %24 = vector.load %arg6[%c0_14, %c0_15] : memref<16x32xf32, #tpu.memory_space<vmem>>, vector<16x32xf32>
    tpu.vector_store %arg6[%c0_14, %c0_15], %23 {strides = array<i32>} : memref<16x32xf32, #tpu.memory_space<vmem>>, vector<16x32xf32>,
    return
  }
  func.func @transform_0(%arg0: i32) -> (i32, i32) {
    %c0_i32 = arith.constant 0 : i32
    %c0_i32_0 = arith.constant 0 : i32
    return %arg0, %c0_i32 : i32, i32
  }
  func.func @transform_1(%arg0: i32) -> (i32, i32) {
    %c0_i32 = arith.constant 0 : i32
    %c0_i32_0 = arith.constant 0 : i32
    %c0_i32_1 = arith.constant 0 : i32
    return %c0_i32, %c0_i32_0 : i32, i32
  }
  func.func @transform_2(%arg0: i32) -> (i32, i32) {
    %c0_i32 = arith.constant 0 : i32
    %c0_i32_0 = arith.constant 0 : i32
    %c0_i32_1 = arith.constant 0 : i32
    return %c0_i32, %c0_i32_0 : i32, i32
  }
  func.func @transform_3(%arg0: i32) -> (i32, i32) {
    %c0_i32 = arith.constant 0 : i32
    %c0_i32_0 = arith.constant 0 : i32
    %c0_i32_1 = arith.constant 0 : i32
    return %c0_i32, %c0_i32_0 : i32, i32
  }
  func.func @transform_4(%arg0: i32) -> (i32, i32) {
    %c0_i32 = arith.constant 0 : i32
    %c0_i32_0 = arith.constant 0 : i32
    %c0_i32_1 = arith.constant 0 : i32
    return %c0_i32, %c0_i32_0 : i32, i32
  }
  func.func @transform_5(%arg0: i32) -> (i32, i32) {
    %c0_i32 = arith.constant 0 : i32
    %c0_i32_0 = arith.constant 0 : i32
    return %arg0, %c0_i32 : i32, i32
  }
}

</mosaic_0001>

<bundles_post_ra>
// kernel: tpu_custom_call.1
= control target key start
LH: loop header
LB: loop body
LE: loop exit
PB: predicated region body
PF: predicated region fallthrough
CT: control target
= control target key end

     0   :  { %s307_s0 = inlined_call_operand.vmem [shape: f32[16,32], index: 0, kind: input, shape index: {}]   ;;  %s308_s1 = inlined_call_operand.vmem [shape: f32[32,128], index: 1, kind: input, shape index: {}]   ;;  %s309_s2 = inlined_call_operand.vmem [shape: f32[1,128], index: 2, kind: input, shape index: {}]   ;;  %s310_s3 = inlined_call_operand.vmem [shape: f32[128,32], index: 3, kind: input, shape index: {}]   ;;  %s311_s4 = inlined_call_operand.vmem [shape: f32[1,32], index: 4, kind: input, shape index: {}]   ;;  %s312_s5 = inlined_call_operand.hbm [shape: f32[16,32], index: 5, kind: output, shape index: {}]  }
   0x1   :  { %v26_v0 = vld [vmem:[%s308_s1 + $0x18] sm:$0xff]  ;;  %v25_v1 = vld [vmem:[%s308_s1 + $0x10] sm:$0xff]  ;;  %v24_v2 = vld [vmem:[%s308_s1 + $0x8] sm:$0xff] }
   0x2   :  { %50 = vmatpush.msra.mxu0 %v26_v0  ;;  %v94_v3 = vld [vmem:[%s310_s3 + $0x78] sm:$0xff]  ;;  %v93_v4 = vld [vmem:[%s310_s3 + $0x70] sm:$0xff]  ;;  %v23_v5 = vld [vmem:[%s308_s1] sm:$0xff] }
   0x3   :  { %99 = vmatpush.msra.mxu1 %v94_v3  ;;  %v92_v6 = vld [vmem:[%s310_s3 + $0x68] sm:$0xff]  ;;  %144 = vmatpush.msra.mxu2 %v94_v3 }
   0x4   :  { %51 = vmatpush.msra.mxu0 %v25_v1 }
   0x5   :  { %10 = vsyncpa [#allocation3], 0  ;;  %v21_v7 = vld [vmem:[%s307_s0] sm:$0xff]  ;;  %vm31_vm0 = vcmask 261120   ;;  %100 = vmatpush.msra.mxu1 %v93_v4  ;;  %145 = vmatpush.msra.mxu2 %v93_v4  ;;  %v22_v8 = vld [vmem:[%s307_s0 + $0x8] sm:$0xff]  ;;  %s195_s11 = smov [#allocation2]  }
   0x6   :  { %52 = vmatpush.msra.mxu0 %v24_v2  ;;  %v91_v9 = vld [vmem:[%s310_s3 + $0x60] sm:$0xff]  ;;  %v90_v10 = vld [vmem:[%s310_s3 + $0x58] sm:$0xff]  ;;  %v89_v11 = vld [vmem:[%s310_s3 + $0x50] sm:$0xff]  ;;  %s128_s12 = sshll.u32 %s195_s11, 4  ;;  %s130_s15 = sshll.u32 %s312_s5, 4  ;;  %s129_s12 = int_to_ptr.vmem [resolvable:$true] %s128_s12  ;;  %s131_s15 = int_to_ptr.hbm [resolvable:$true] %s130_s15 }
   0x7   :  { %101 = vmatpush.msra.mxu1 %v92_v6  ;;  %146 = vmatpush.msra.mxu2 %v92_v6  ;;  %v88_v12 = vld [vmem:[%s310_s3 + $0x48] sm:$0xff]  ;;  %v87_v13 = vld [vmem:[%s310_s3 + $0x40] sm:$0xff]  ;;  %v86_v14 = vld [vmem:[%s310_s3 + $0x38] sm:$0xff]  ;;  %s196_s0 = smov 128   ;;  %s197_s16 = smov 8  }
   0x8   :  { %53 = vmatpush.msra.mxu0 %v23_v5  ;;  %v85_v15 = vld [vmem:[%s310_s3 + $0x30] sm:$0xff]  ;;  %v84_v16 = vld [vmem:[%s310_s3 + $0x28] sm:$0xff]  ;;  %v83_v17 = vld [vmem:[%s310_s3 + $0x20] sm:$0xff] }
   0x9   :  { %142 = vmatmul.msk.f32.vlgmr.msra.gmra.mxu0 %vm31_vm0, %v21_v7  ;;  %102 = vmatpush.msra.mxu1 %v91_v9  ;;  %v82_v18 = vld [vmem:[%s310_s3 + $0x18] sm:$0xff]  ;;  %v81_v19 = vld [vmem:[%s310_s3 + $0x10] sm:$0xff]  ;;  %v80_v20 = vld [vmem:[%s310_s3 + $0x8] sm:$0xff] }
   0xa   :  { %147 = vmatpush.msra.mxu2 %v91_v9  ;;  %v79_v21 = vld [vmem:[%s310_s3] sm:$0xff] }
   0xb   :  { %103 = vmatpush.msra.mxu1 %v90_v10  ;;  %v163_v22 = vld [vmem:[%s309_s2] ss:$0 sm:$0xff] }
   0xc   :  { %148 = vmatpush.msra.mxu2 %v90_v10  ;;  %v164_v45 = vld [vmem:[%s311_s4] ss:$0 sm:$0xff] }
   0xd   :  { %104 = vmatpush.msra.mxu1 %v89_v11 }
   0xe   :  { %149 = vmatpush.msra.mxu2 %v89_v11 }
   0xf   :  { %105 = vmatpush.msra.mxu1 %v88_v12 }
  0x10   :  { %150 = vmatpush.msra.mxu2 %v88_v12 }
  0x11   :  { %143 = vmatmul.msk.f32.gmra.mxu0 %vm31_vm0, %v22_v8  ;;  %106 = vmatpush.msra.mxu1 %v87_v13 }
  0x12   :  { %151 = vmatpush.msra.mxu2 %v87_v13 }
  0x13   :  { %107 = vmatpush.msra.mxu1 %v86_v14 }
  0x14   :  { %152 = vmatpush.msra.mxu2 %v86_v14 }
  0x15   :  { %108 = vmatpush.msra.mxu1 %v85_v15 }
  0x16   :  { %153 = vmatpush.msra.mxu2 %v85_v15 }
  0x17   :  { %109 = vmatpush.msra.mxu1 %v84_v16 }
  0x18   :  { %154 = vmatpush.msra.mxu2 %v84_v16 }
  0x19   :  { %110 = vmatpush.msra.mxu1 %v83_v17 }
  0x1a   :  { %155 = vmatpush.msra.mxu2 %v83_v17 }
  0x1b   :  { %111 = vmatpush.msra.mxu1 %v82_v18 }
  0x1c   :  { %156 = vmatpush.msra.mxu2 %v82_v18 }
  0x1d   :  { %112 = vmatpush.msra.mxu1 %v81_v19 }
  0x1e   :  { %157 = vmatpush.msra.mxu2 %v81_v19 }
  0x1f   :  { %113 = vmatpush.msra.mxu1 %v80_v20 }
  0x20   :  { %158 = vmatpush.msra.mxu2 %v80_v20 }
  0x21   :  { %114 = vmatpush.msra.mxu1 %v79_v21 }
  0x22   :  { %159 = vmatpush.msra.mxu2 %v79_v21 }
  0x86   :  { %v55_v23 = vpop.f32.mrf.mxu0 }
  0x87   :  { %v56_v24 = vadd.f32 %v163_v22, %v55_v23 }
  0x89   :  { %v61_v25 = vmul.f32 %v56_v24, %v56_v24 }
  0x8b   :  { %v63_v26 = vmul.f32 %v61_v25, %v56_v24 }
  0x8d   :  { %v65_v27 = vmul.f32 0.044715, %v63_v26 }
  0x8e   :  { %v58_v28 = vpop.f32.mrf.mxu0 }
  0x8f   :  { %v59_v29 = vadd.f32 %v163_v22, %v58_v28  ;;  %v67_v30 = vadd.f32 %v65_v27, %v56_v24 }
  0x91   :  { %v62_v31 = vmul.f32 %v59_v29, %v59_v29  ;;  %v69_v32 = vmul.f32 0.7978846, %v67_v30 }
  0x93   :  { %v64_v33 = vmul.f32 %v62_v31, %v59_v29  ;;  %165 = vtanh.f32 %v69_v32 }
  0x95   :  { %v66_v34 = vmul.f32 0.044715, %v64_v33 }
  0x97   :  { %v68_v35 = vadd.f32 %v66_v34, %v59_v29 }
  0x99   :  { %v166_v36 = vpop.eup %165  ;;  %v70_v37 = vmul.f32 0.7978846, %v68_v35 }
  0x9a   :  { %v73_v38 = vmul.f32 0.5, %v166_v36 }
  0x9b   :  { %167 = vtanh.f32 %v70_v37 }
  0x9c   :  { %v75_v39 = vadd.f32 0.5, %v73_v38 }
  0x9e   :  { %v77_v40 = vmul.f32 %v75_v39, %v56_v24 }
  0xa0   :  { %115 = vmatmul.f32.vlgmr.msra.gmra.mxu1 %v77_v40 }
  0xa1   :  { %v168_v41 = vpop.eup %167 }
  0xa2   :  { %v74_v42 = vmul.f32 0.5, %v168_v41 }
  0xa4   :  { %v76_v43 = vadd.f32 0.5, %v74_v42 }
  0xa6   :  { %v78_v44 = vmul.f32 %v76_v43, %v59_v29 }
  0xa8   :  { %118 = vmatmul.f32.vlgmr.msra.gmra.mxu2 %v78_v44 }
 0x11d   :  { %v116_v46 = vpop.f32.mrf.mxu1 }
 0x11e   :  { %v117_v47 = vadd.f32 %v164_v45, %v116_v46 }
 0x120   :  { %122 = vst.msk [vmem:[#allocation2] sm:$0xff] %vm31_vm0, %v117_v47 }
 0x12b   :  { %v119_v48 = vpop.f32.mrf.mxu2 }
 0x12c   :  { %v120_v49 = vadd.f32 %v164_v45, %v119_v48 }
 0x12e   :  { %123 = vst.msk [vmem:[#allocation2 + $0x8] sm:$0xff] %vm31_vm0, %v120_v49 }
 0x12f   :  { %136 = dma.vmem_to_hbm [thread:$0]  %s129_s12, 256, %s131_s15, [#allocation3], %s196_s0, %s196_s0, %s197_s16  }
 0x130   :  { %193 = dma.done.wait [#allocation3], 256  }
 0x131   :  { %194 = vsyncadd [#allocation3], 4294967040 }
 0x132   :  { %141 = vsyncpa [#allocation3], 1 }

</bundles_post_ra>
